<compile_context>
chip_gen: v5e
topology: v5e:2x2
jax: 0.10.0
libtpu: 0.0.40
codegen_flags: <defaults>
</compile_context>

<pallas_src>
import jax
import jax.numpy as jnp
from jax.experimental import pallas as pl
from jax.experimental.pallas import tpu as pltpu


def _gru_kernel(obs_ref, act_ref, h0_ref, wo_ref, wa_ref, whh_ref,
                bgi_ref, bhn_ref, out_ref, gi_ref):
    """Full GRU sequence in one kernel invocation (PyTorch gate order r, z, n).

    obs_ref : (B*T, O)  batch-first flattened; row b*T + t is (batch b, time t)
    act_ref : (B*T, A)
    h0_ref  : (B, H)
    wo_ref  : (O, 3H)   = W_ih[:, :O]^T
    wa_ref  : (A, 3H)   = W_ih[:, O:]^T
    whh_ref : (H, 3H)   = W_hh^T
    bgi_ref : (1, 3H)   = [b_ih_r + b_hh_r, b_ih_z + b_hh_z, b_ih_n]
    bhn_ref : (1, H)    = b_hh_n
    out_ref : (B, T*H)  lane-dense output (single unmasked store)
    gi_ref  : (B*T, 3H) VMEM scratch holding the hoisted input projection
    """
    B, H = h0_ref.shape
    T = out_ref.shape[1] // H

    # ---- hoisted input projection: one MXU pass for the whole sequence ----
    gi = jnp.dot(obs_ref[...], wo_ref[...], preferred_element_type=jnp.float32)
    if act_ref.shape[1] == 1:
        # action_dim == 1: the "matmul" is an outer product -> pure VPU broadcast
        gi = gi + act_ref[...] * wa_ref[...]
    else:
        gi = gi + jnp.dot(act_ref[...], wa_ref[...],
                          preferred_element_type=jnp.float32)
    gi_ref[...] = gi + bgi_ref[...]

    w_hh = whh_ref[...]
    b_hn = bhn_ref[...]
    h = h0_ref[...].astype(jnp.float32)

    # Fully unrolled time loop (T static under jit): h stays in vregs, the
    # strided gi loads do not depend on h so the scheduler overlaps them with
    # the serial chain of tiny recurrent matmuls.
    outs = []
    for t in range(T):
        gi_t = gi_ref[pl.ds(t, B, stride=T), :]            # rows b*T + t
        gh = jnp.dot(h, w_hh, preferred_element_type=jnp.float32)
        r = jax.nn.sigmoid(gi_t[:, :H] + gh[:, :H])
        z = jax.nn.sigmoid(gi_t[:, H:2 * H] + gh[:, H:2 * H])
        n = jnp.tanh(gi_t[:, 2 * H:] + r * (gh[:, 2 * H:] + b_hn))
        h = (1.0 - z) * n + z * h
        outs.append(h)

    # single lane-dense writeback: (B, T*H) with T*H a multiple of 128 when T>=4
    out_ref[...] = jnp.concatenate(outs, axis=1).astype(out_ref.dtype)


@jax.jit
def _gru_pallas(obs_flat, act_flat, h0, w_obs_t, w_act_t, w_hh_t, b_gi, b_hn):
    """obs_flat: (B*T, O), act_flat: (B*T, A) batch-first.  Returns (B, T*H)."""
    BT, O = obs_flat.shape
    A = act_flat.shape[1]
    B, H = h0.shape
    T = BT // B
    G = 3 * H

    flops = 2 * BT * (O + A) * G + 2 * T * B * H * G
    transcendentals = 3 * T * B * H
    bytes_accessed = 4 * (BT * (O + A) + B * H + (O + A + H) * G + G + H
                          + B * T * H)

    return pl.pallas_call(
        _gru_kernel,
        out_shape=jax.ShapeDtypeStruct((B, T * H), jnp.float32),
        grid=(1,),
        in_specs=[
            pl.BlockSpec((BT, O), lambda i: (0, 0)),       # obs (full block)
            pl.BlockSpec((BT, A), lambda i: (0, 0)),       # action
            pl.BlockSpec((B, H), lambda i: (0, 0)),        # h0
            pl.BlockSpec((O, G), lambda i: (0, 0)),        # W_obs^T
            pl.BlockSpec((A, G), lambda i: (0, 0)),        # W_act^T
            pl.BlockSpec((H, G), lambda i: (0, 0)),        # W_hh^T
            pl.BlockSpec((1, G), lambda i: (0, 0)),        # merged r/z/n input bias
            pl.BlockSpec((1, H), lambda i: (0, 0)),        # b_hh_n
        ],
        out_specs=pl.BlockSpec((B, T * H), lambda i: (0, 0)),
        scratch_shapes=[pltpu.VMEM((BT, G), jnp.float32)],
        compiler_params=pltpu.CompilerParams(
            dimension_semantics=("arbitrary",)),
        cost_estimate=pl.CostEstimate(
            flops=flops, transcendentals=transcendentals,
            bytes_accessed=bytes_accessed),
    )(obs_flat, act_flat, h0, w_obs_t, w_act_t, w_hh_t, b_gi, b_hn)


class HistoryEncoder:
    """JAX/Pallas port of marl.models.belief_vae.HistoryEncoder (forward only)."""

    def __init__(self, obs_dim, action_dim=1, hidden_dim=64, key=None):
        self.obs_dim = obs_dim
        self.action_dim = action_dim
        self.hidden_dim = hidden_dim
        input_size = obs_dim + action_dim
        if key is None:
            key = jax.random.PRNGKey(0)
        k1, k2, k3, k4 = jax.random.split(key, 4)
        bound = 1.0 / jnp.sqrt(hidden_dim)
        H = hidden_dim
        # PyTorch GRU params: weight_ih (3H, I), weight_hh (3H, H), biases (3H,)
        w_ih = jax.random.uniform(k1, (3 * H, input_size), jnp.float32, -bound, bound)
        w_hh = jax.random.uniform(k2, (3 * H, H), jnp.float32, -bound, bound)
        b_ih = jax.random.uniform(k3, (3 * H,), jnp.float32, -bound, bound)
        b_hh = jax.random.uniform(k4, (3 * H,), jnp.float32, -bound, bound)
        # transposed weights so the kernel does x @ W^T as plain matmuls
        self.w_ih_t = jnp.transpose(w_ih)                  # (I, 3H) (for reference)
        self.w_hh_t = jnp.transpose(w_hh)                  # (H, 3H)
        # split W_ih so the kernel never needs a wrapper-side concat of [obs, act]
        self.w_obs_t = self.w_ih_t[:obs_dim, :]            # (O, 3H)
        self.w_act_t = self.w_ih_t[obs_dim:, :]            # (A, 3H)
        # raw biases kept for the pure-JAX reference
        self.b_ih = b_ih.reshape(1, 3 * H)
        self.b_hh = b_hh.reshape(1, 3 * H)
        # pre-merged biases for the kernel:
        #   r/z gates: b_ih + b_hh folded together (added once, off the loop)
        #   n gate   : b_ih_n folded into gi; b_hh_n kept separate (inside r*(...))
        self.b_gi = jnp.concatenate(
            [b_ih[:H] + b_hh[:H],
             b_ih[H:2 * H] + b_hh[H:2 * H],
             b_ih[2 * H:]], axis=0).reshape(1, 3 * H)
        self.b_hn = b_hh[2 * H:].reshape(1, H)

    def __call__(self, obs, action=None, hidden_state=None):
        if obs.ndim == 2:                                  # (B, obs_dim) -> (B, 1, obs_dim)
            obs = obs[:, None, :]
            if action is not None and action.ndim == 2:
                action = action[:, None, :]
        B, T, O = obs.shape
        if action is None:
            action = jnp.zeros((B, T, self.action_dim), obs.dtype)
        squeeze_time = (T == 1)
        if hidden_state is None:
            h0 = jnp.zeros((B, self.hidden_dim), jnp.float32)
        else:
            h0 = hidden_state.reshape(B, self.hidden_dim).astype(jnp.float32)

        # pad batch to a full sublane tile (8 rows) so every per-step tile in
        # the kernel is aligned; garbage rows are sliced off afterwards
        B_pad = ((B + 7) // 8) * 8
        if B_pad != B:
            pad = B_pad - B
            obs = jnp.pad(obs, ((0, pad), (0, 0), (0, 0)))
            action = jnp.pad(action, ((0, pad), (0, 0), (0, 0)))
            h0 = jnp.pad(h0, ((0, pad), (0, 0)))

        # batch-first flatten is a free reshape (no HBM transpose)
        obs_flat = obs.astype(jnp.float32).reshape(B_pad * T, O)
        act_flat = action.astype(jnp.float32).reshape(B_pad * T, self.action_dim)

        out = _gru_pallas(obs_flat, act_flat, h0, self.w_obs_t, self.w_act_t,
                          self.w_hh_t, self.b_gi, self.b_hn)       # (B_pad, T*H)
        output = out.reshape(B_pad, T, self.hidden_dim)[:B]        # free reshape + slice
        new_hidden = output[:, -1, :][None, :, :]                  # (1, B, H)
        if squeeze_time:
            output = output[:, 0, :]
        return output, new_hidden


def _gru_reference(x, h0, w_ih_t, w_hh_t, b_ih, b_hh):
    """Pure-JAX reference (batch-first x: (B, T, I)), PyTorch nn.GRU semantics."""
    H = h0.shape[-1]

    def step(h, x_t):
        gi = x_t @ w_ih_t + b_ih
        gh = h @ w_hh_t + b_hh
        r = jax.nn.sigmoid(gi[:, :H] + gh[:, :H])
        z = jax.nn.sigmoid(gi[:, H:2 * H] + gh[:, H:2 * H])
        n = jnp.tanh(gi[:, 2 * H:] + r * gh[:, 2 * H:])
        h_new = (1 - z) * n + z * h
        return h_new, h_new

    h_n, outs = jax.lax.scan(step, h0, jnp.transpose(x, (1, 0, 2)))
    return jnp.transpose(outs, (1, 0, 2)), h_n


if __name__ == "__main__":
    key = jax.random.PRNGKey(0)
    k_obs, k_act, k_params = jax.random.split(key, 3)

    B, T = 2, 8
    obs_dim, action_dim, hidden_dim = 15, 1, 32            # input_size = 16

    enc = HistoryEncoder(obs_dim, action_dim=action_dim,
                         hidden_dim=hidden_dim, key=k_params)

    obs = jax.random.normal(k_obs, (B, T, obs_dim), jnp.float32)
    action = jax.random.normal(k_act, (B, T, action_dim), jnp.float32)

    # 3D sequence path (with explicit action)
    output, new_hidden = enc(obs, action)
    output = jax.block_until_ready(output)
    new_hidden = jax.block_until_ready(new_hidden)
    assert output.shape == (B, T, hidden_dim)
    assert new_hidden.shape == (1, B, hidden_dim)

    # 2D single-step path (action defaults to zeros), with a carried hidden state
    out1, hid1 = enc(obs[:, 0, :], hidden_state=new_hidden)
    out1 = jax.block_until_ready(out1)
    assert out1.shape == (B, hidden_dim)
    assert hid1.shape == (1, B, hidden_dim)

    # correctness vs pure-JAX GRU reference
    x_full = jnp.concatenate([obs, action], axis=-1)
    ref_out, ref_hn = _gru_reference(
        x_full, jnp.zeros((B, hidden_dim), jnp.float32),
        enc.w_ih_t, enc.w_hh_t, enc.b_ih, enc.b_hh)
    assert jnp.allclose(output, ref_out, atol=1e-5, rtol=1e-5)
    assert jnp.allclose(new_hidden[0], ref_hn, atol=1e-5, rtol=1e-5)
    assert jnp.allclose(new_hidden[0], output[:, -1, :], atol=1e-6)

    print("KERNEL_OK")
</pallas_src>

<mosaic_0001>
module attributes {stable_mosaic.version = 11 : i64} {
  func.func @_gru_kernel(%arg0: i32, %arg1: memref<64x15xf32, #tpu.memory_space<vmem>>, %arg2: memref<64x1xf32, #tpu.memory_space<vmem>>, %arg3: memref<8x32xf32, #tpu.memory_space<vmem>>, %arg4: memref<15x96xf32, #tpu.memory_space<vmem>>, %arg5: memref<1x96xf32, #tpu.memory_space<vmem>>, %arg6: memref<32x96xf32, #tpu.memory_space<vmem>>, %arg7: memref<1x96xf32, #tpu.memory_space<vmem>>, %arg8: memref<1x32xf32, #tpu.memory_space<vmem>>, %arg9: memref<8x256xf32, #tpu.memory_space<vmem>>, %arg10: memref<64x96xf32, #tpu.memory_space<vmem>>) attributes {dimension_semantics = [#tpu.dimension_semantics<arbitrary>], iteration_bounds = array<i64: 1>, scalar_prefetch = 0 : i64, scratch_operands = 1 : i64, tpu.core_type = #tpu.core_type<tc>, window_params = [{pipeline_mode = #tpu.pipeline_mode<synchronous>, transform_indices = @transform_0, window_bounds = array<i64: 64, 15>}, {pipeline_mode = #tpu.pipeline_mode<synchronous>, transform_indices = @transform_1, window_bounds = array<i64: 64, 1>}, {pipeline_mode = #tpu.pipeline_mode<synchronous>, transform_indices = @transform_2, window_bounds = array<i64: 8, 32>}, {pipeline_mode = #tpu.pipeline_mode<synchronous>, transform_indices = @transform_3, window_bounds = array<i64: 15, 96>}, {pipeline_mode = #tpu.pipeline_mode<synchronous>, transform_indices = @transform_4, window_bounds = array<i64: 1, 96>}, {pipeline_mode = #tpu.pipeline_mode<synchronous>, transform_indices = @transform_5, window_bounds = array<i64: 32, 96>}, {pipeline_mode = #tpu.pipeline_mode<synchronous>, transform_indices = @transform_6, window_bounds = array<i64: 1, 96>}, {pipeline_mode = #tpu.pipeline_mode<synchronous>, transform_indices = @transform_7, window_bounds = array<i64: 1, 32>}, {pipeline_mode = #tpu.pipeline_mode<synchronous>, transform_indices = @transform_8, window_bounds = array<i64: 8, 256>}]} {
    %c0 = arith.constant 0 : index
    %c0_0 = arith.constant 0 : index
    %0 = vector.load %arg1[%c0, %c0_0] : memref<64x15xf32, #tpu.memory_space<vmem>>, vector<64x15xf32>
    %c0_1 = arith.constant 0 : index
    %c0_2 = arith.constant 0 : index
    %1 = vector.load %arg4[%c0_1, %c0_2] : memref<15x96xf32, #tpu.memory_space<vmem>>, vector<15x96xf32>
    %cst = arith.constant dense<0.000000e+00> : vector<64x96xf32>
    %2 = tpu.matmul %0, %1, %cst {dimension_numbers = #tpu.dot_dimension_numbers<[1], [0], [0], [1], [0, 0, 1, 1], [], []>} : vector<64x15xf32>, vector<15x96xf32>, vector<64x96xf32> -> vector<64x96xf32>
    %c0_3 = arith.constant 0 : index
    %c0_4 = arith.constant 0 : index
    %3 = vector.load %arg2[%c0_3, %c0_4] : memref<64x1xf32, #tpu.memory_space<vmem>>, vector<64x1xf32>
    %c0_5 = arith.constant 0 : index
    %c0_6 = arith.constant 0 : index
    %4 = vector.load %arg5[%c0_5, %c0_6] : memref<1x96xf32, #tpu.memory_space<vmem>>, vector<1x96xf32>
    %5 = vector.broadcast %3 : vector<64x1xf32> to vector<64x96xf32>
    %6 = vector.broadcast %4 : vector<1x96xf32> to vector<64x96xf32>
    %7 = arith.mulf %5, %6 : vector<64x96xf32>
    %8 = arith.addf %2, %7 : vector<64x96xf32>
    %c0_7 = arith.constant 0 : index
    %c0_8 = arith.constant 0 : index
    %9 = vector.load %arg7[%c0_7, %c0_8] : memref<1x96xf32, #tpu.memory_space<vmem>>, vector<1x96xf32>
    %10 = vector.broadcast %9 : vector<1x96xf32> to vector<64x96xf32>
    %11 = arith.addf %8, %10 : vector<64x96xf32>
    %c0_9 = arith.constant 0 : index
    %c0_10 = arith.constant 0 : index
    %12 = vector.load %arg10[%c0_9, %c0_10] : memref<64x96xf32, #tpu.memory_space<vmem>>, vector<64x96xf32>
    tpu.vector_store %arg10[%c0_9, %c0_10], %11 {strides = array<i32>} : memref<64x96xf32, #tpu.memory_space<vmem>>, vector<64x96xf32>,
    %c0_11 = arith.constant 0 : index
    %c0_12 = arith.constant 0 : index
    %13 = vector.load %arg6[%c0_11, %c0_12] : memref<32x96xf32, #tpu.memory_space<vmem>>, vector<32x96xf32>
    %c0_13 = arith.constant 0 : index
    %c0_14 = arith.constant 0 : index
    %14 = vector.load %arg8[%c0_13, %c0_14] : memref<1x32xf32, #tpu.memory_space<vmem>>, vector<1x32xf32>
    %c0_15 = arith.constant 0 : index
    %c0_16 = arith.constant 0 : index
    %15 = vector.load %arg3[%c0_15, %c0_16] : memref<8x32xf32, #tpu.memory_space<vmem>>, vector<8x32xf32>
    %c0_17 = arith.constant 0 : index
    %c0_18 = arith.constant 0 : index
    %16 = tpu.strided_load %arg10[%c0_17, %c0_18] {strides = array<i32: 8, 1>} : memref<64x96xf32, #tpu.memory_space<vmem>>, vector<8x96xf32>
    %cst_19 = arith.constant dense<0.000000e+00> : vector<8x96xf32>
    %17 = tpu.matmul %15, %13, %cst_19 {dimension_numbers = #tpu.dot_dimension_numbers<[1], [0], [0], [1], [0, 0, 1, 1], [], []>} : vector<8x32xf32>, vector<32x96xf32>, vector<8x96xf32> -> vector<8x96xf32>
    %18 = vector.extract_strided_slice %16 {offsets = [0, 0], sizes = [8, 32], strides = [1, 1]} : vector<8x96xf32> to vector<8x32xf32>
    %19 = vector.extract_strided_slice %17 {offsets = [0, 0], sizes = [8, 32], strides = [1, 1]} : vector<8x96xf32> to vector<8x32xf32>
    %20 = arith.addf %18, %19 : vector<8x32xf32>
    %21 = arith.negf %20 : vector<8x32xf32>
    %22 = math.exp %21 : vector<8x32xf32>
    %cst_20 = arith.constant 1.000000e+00 : f32
    %23 = vector.broadcast %cst_20 : f32 to vector<8x32xf32>
    %24 = arith.addf %23, %22 : vector<8x32xf32>
    %25 = arith.divf %23, %24 : vector<8x32xf32>
    %26 = vector.extract_strided_slice %16 {offsets = [0, 32], sizes = [8, 32], strides = [1, 1]} : vector<8x96xf32> to vector<8x32xf32>
    %27 = vector.extract_strided_slice %17 {offsets = [0, 32], sizes = [8, 32], strides = [1, 1]} : vector<8x96xf32> to vector<8x32xf32>
    %28 = arith.addf %26, %27 : vector<8x32xf32>
    %29 = arith.negf %28 : vector<8x32xf32>
    %30 = math.exp %29 : vector<8x32xf32>
    %cst_21 = arith.constant 1.000000e+00 : f32
    %31 = vector.broadcast %cst_21 : f32 to vector<8x32xf32>
    %32 = arith.addf %31, %30 : vector<8x32xf32>
    %33 = arith.divf %31, %32 : vector<8x32xf32>
    %34 = vector.extract_strided_slice %16 {offsets = [0, 64], sizes = [8, 32], strides = [1, 1]} : vector<8x96xf32> to vector<8x32xf32>
    %35 = vector.extract_strided_slice %17 {offsets = [0, 64], sizes = [8, 32], strides = [1, 1]} : vector<8x96xf32> to vector<8x32xf32>
    %36 = vector.broadcast %14 : vector<1x32xf32> to vector<8x32xf32>
    %37 = arith.addf %35, %36 : vector<8x32xf32>
    %38 = arith.mulf %25, %37 : vector<8x32xf32>
    %39 = arith.addf %34, %38 : vector<8x32xf32>
    %40 = math.tanh %39 : vector<8x32xf32>
    %cst_22 = arith.constant 1.000000e+00 : f32
    %41 = vector.broadcast %cst_22 : f32 to vector<8x32xf32>
    %42 = arith.subf %41, %33 : vector<8x32xf32>
    %43 = arith.mulf %42, %40 : vector<8x32xf32>
    %44 = arith.mulf %33, %15 : vector<8x32xf32>
    %45 = arith.addf %43, %44 : vector<8x32xf32>
    %c1 = arith.constant 1 : index
    %c0_23 = arith.constant 0 : index
    %46 = tpu.strided_load %arg10[%c1, %c0_23] {strides = array<i32: 8, 1>} : memref<64x96xf32, #tpu.memory_space<vmem>>, vector<8x96xf32>
    %cst_24 = arith.constant dense<0.000000e+00> : vector<8x96xf32>
    %47 = tpu.matmul %45, %13, %cst_24 {dimension_numbers = #tpu.dot_dimension_numbers<[1], [0], [0], [1], [0, 0, 1, 1], [], []>} : vector<8x32xf32>, vector<32x96xf32>, vector<8x96xf32> -> vector<8x96xf32>
    %48 = vector.extract_strided_slice %46 {offsets = [0, 0], sizes = [8, 32], strides = [1, 1]} : vector<8x96xf32> to vector<8x32xf32>
    %49 = vector.extract_strided_slice %47 {offsets = [0, 0], sizes = [8, 32], strides = [1, 1]} : vector<8x96xf32> to vector<8x32xf32>
    %50 = arith.addf %48, %49 : vector<8x32xf32>
    %51 = arith.negf %50 : vector<8x32xf32>
    %52 = math.exp %51 : vector<8x32xf32>
    %cst_25 = arith.constant 1.000000e+00 : f32
    %53 = vector.broadcast %cst_25 : f32 to vector<8x32xf32>
    %54 = arith.addf %53, %52 : vector<8x32xf32>
    %55 = arith.divf %53, %54 : vector<8x32xf32>
    %56 = vector.extract_strided_slice %46 {offsets = [0, 32], sizes = [8, 32], strides = [1, 1]} : vector<8x96xf32> to vector<8x32xf32>
    %57 = vector.extract_strided_slice %47 {offsets = [0, 32], sizes = [8, 32], strides = [1, 1]} : vector<8x96xf32> to vector<8x32xf32>
    %58 = arith.addf %56, %57 : vector<8x32xf32>
    %59 = arith.negf %58 : vector<8x32xf32>
    %60 = math.exp %59 : vector<8x32xf32>
    %cst_26 = arith.constant 1.000000e+00 : f32
    %61 = vector.broadcast %cst_26 : f32 to vector<8x32xf32>
    %62 = arith.addf %61, %60 : vector<8x32xf32>
    %63 = arith.divf %61, %62 : vector<8x32xf32>
    %64 = vector.extract_strided_slice %46 {offsets = [0, 64], sizes = [8, 32], strides = [1, 1]} : vector<8x96xf32> to vector<8x32xf32>
    %65 = vector.extract_strided_slice %47 {offsets = [0, 64], sizes = [8, 32], strides = [1, 1]} : vector<8x96xf32> to vector<8x32xf32>
    %66 = vector.broadcast %14 : vector<1x32xf32> to vector<8x32xf32>
    %67 = arith.addf %65, %66 : vector<8x32xf32>
    %68 = arith.mulf %55, %67 : vector<8x32xf32>
    %69 = arith.addf %64, %68 : vector<8x32xf32>
    %70 = math.tanh %69 : vector<8x32xf32>
    %cst_27 = arith.constant 1.000000e+00 : f32
    %71 = vector.broadcast %cst_27 : f32 to vector<8x32xf32>
    %72 = arith.subf %71, %63 : vector<8x32xf32>
    %73 = arith.mulf %72, %70 : vector<8x32xf32>
    %74 = arith.mulf %63, %45 : vector<8x32xf32>
    %75 = arith.addf %73, %74 : vector<8x32xf32>
    %c2 = arith.constant 2 : index
    %c0_28 = arith.constant 0 : index
    %76 = tpu.strided_load %arg10[%c2, %c0_28] {strides = array<i32: 8, 1>} : memref<64x96xf32, #tpu.memory_space<vmem>>, vector<8x96xf32>
    %cst_29 = arith.constant dense<0.000000e+00> : vector<8x96xf32>
    %77 = tpu.matmul %75, %13, %cst_29 {dimension_numbers = #tpu.dot_dimension_numbers<[1], [0], [0], [1], [0, 0, 1, 1], [], []>} : vector<8x32xf32>, vector<32x96xf32>, vector<8x96xf32> -> vector<8x96xf32>
    %78 = vector.extract_strided_slice %76 {offsets = [0, 0], sizes = [8, 32], strides = [1, 1]} : vector<8x96xf32> to vector<8x32xf32>
    %79 = vector.extract_strided_slice %77 {offsets = [0, 0], sizes = [8, 32], strides = [1, 1]} : vector<8x96xf32> to vector<8x32xf32>
    %80 = arith.addf %78, %79 : vector<8x32xf32>
    %81 = arith.negf %80 : vector<8x32xf32>
    %82 = math.exp %81 : vector<8x32xf32>
    %cst_30 = arith.constant 1.000000e+00 : f32
    %83 = vector.broadcast %cst_30 : f32 to vector<8x32xf32>
    %84 = arith.addf %83, %82 : vector<8x32xf32>
    %85 = arith.divf %83, %84 : vector<8x32xf32>
    %86 = vector.extract_strided_slice %76 {offsets = [0, 32], sizes = [8, 32], strides = [1, 1]} : vector<8x96xf32> to vector<8x32xf32>
    %87 = vector.extract_strided_slice %77 {offsets = [0, 32], sizes = [8, 32], strides = [1, 1]} : vector<8x96xf32> to vector<8x32xf32>
    %88 = arith.addf %86, %87 : vector<8x32xf32>
    %89 = arith.negf %88 : vector<8x32xf32>
    %90 = math.exp %89 : vector<8x32xf32>
    %cst_31 = arith.constant 1.000000e+00 : f32
    %91 = vector.broadcast %cst_31 : f32 to vector<8x32xf32>
    %92 = arith.addf %91, %90 : vector<8x32xf32>
    %93 = arith.divf %91, %92 : vector<8x32xf32>
    %94 = vector.extract_strided_slice %76 {offsets = [0, 64], sizes = [8, 32], strides = [1, 1]} : vector<8x96xf32> to vector<8x32xf32>
    %95 = vector.extract_strided_slice %77 {offsets = [0, 64], sizes = [8, 32], strides = [1, 1]} : vector<8x96xf32> to vector<8x32xf32>
    %96 = vector.broadcast %14 : vector<1x32xf32> to vector<8x32xf32>
    %97 = arith.addf %95, %96 : vector<8x32xf32>
    %98 = arith.mulf %85, %97 : vector<8x32xf32>
    %99 = arith.addf %94, %98 : vector<8x32xf32>
    %100 = math.tanh %99 : vector<8x32xf32>
    %cst_32 = arith.constant 1.000000e+00 : f32
    %101 = vector.broadcast %cst_32 : f32 to vector<8x32xf32>
    %102 = arith.subf %101, %93 : vector<8x32xf32>
    %103 = arith.mulf %102, %100 : vector<8x32xf32>
    %104 = arith.mulf %93, %75 : vector<8x32xf32>
    %105 = arith.addf %103, %104 : vector<8x32xf32>
    %c3 = arith.constant 3 : index
    %c0_33 = arith.constant 0 : index
    %106 = tpu.strided_load %arg10[%c3, %c0_33] {strides = array<i32: 8, 1>} : memref<64x96xf32, #tpu.memory_space<vmem>>, vector<8x96xf32>
    %cst_34 = arith.constant dense<0.000000e+00> : vector<8x96xf32>
    %107 = tpu.matmul %105, %13, %cst_34 {dimension_numbers = #tpu.dot_dimension_numbers<[1], [0], [0], [1], [0, 0, 1, 1], [], []>} : vector<8x32xf32>, vector<32x96xf32>, vector<8x96xf32> -> vector<8x96xf32>
    %108 = vector.extract_strided_slice %106 {offsets = [0, 0], sizes = [8, 32], strides = [1, 1]} : vector<8x96xf32> to vector<8x32xf32>
    %109 = vector.extract_strided_slice %107 {offsets = [0, 0], sizes = [8, 32], strides = [1, 1]} : vector<8x96xf32> to vector<8x32xf32>
    %110 = arith.addf %108, %109 : vector<8x32xf32>
    %111 = arith.negf %110 : vector<8x32xf32>
    %112 = math.exp %111 : vector<8x32xf32>
    %cst_35 = arith.constant 1.000000e+00 : f32
    %113 = vector.broadcast %cst_35 : f32 to vector<8x32xf32>
    %114 = arith.addf %113, %112 : vector<8x32xf32>
    %115 = arith.divf %113, %114 : vector<8x32xf32>
    %116 = vector.extract_strided_slice %106 {offsets = [0, 32], sizes = [8, 32], strides = [1, 1]} : vector<8x96xf32> to vector<8x32xf32>
    %117 = vector.extract_strided_slice %107 {offsets = [0, 32], sizes = [8, 32], strides = [1, 1]} : vector<8x96xf32> to vector<8x32xf32>
    %118 = arith.addf %116, %117 : vector<8x32xf32>
    %119 = arith.negf %118 : vector<8x32xf32>
    %120 = math.exp %119 : vector<8x32xf32>
    %cst_36 = arith.constant 1.000000e+00 : f32
    %121 = vector.broadcast %cst_36 : f32 to vector<8x32xf32>
    %122 = arith.addf %121, %120 : vector<8x32xf32>
    %123 = arith.divf %121, %122 : vector<8x32xf32>
    %124 = vector.extract_strided_slice %106 {offsets = [0, 64], sizes = [8, 32], strides = [1, 1]} : vector<8x96xf32> to vector<8x32xf32>
    %125 = vector.extract_strided_slice %107 {offsets = [0, 64], sizes = [8, 32], strides = [1, 1]} : vector<8x96xf32> to vector<8x32xf32>
    %126 = vector.broadcast %14 : vector<1x32xf32> to vector<8x32xf32>
    %127 = arith.addf %125, %126 : vector<8x32xf32>
    %128 = arith.mulf %115, %127 : vector<8x32xf32>
    %129 = arith.addf %124, %128 : vector<8x32xf32>
    %130 = math.tanh %129 : vector<8x32xf32>
    %cst_37 = arith.constant 1.000000e+00 : f32
    %131 = vector.broadcast %cst_37 : f32 to vector<8x32xf32>
    %132 = arith.subf %131, %123 : vector<8x32xf32>
    %133 = arith.mulf %132, %130 : vector<8x32xf32>
    %134 = arith.mulf %123, %105 : vector<8x32xf32>
    %135 = arith.addf %133, %134 : vector<8x32xf32>
    %c4 = arith.constant 4 : index
    %c0_38 = arith.constant 0 : index
    %136 = tpu.strided_load %arg10[%c4, %c0_38] {strides = array<i32: 8, 1>} : memref<64x96xf32, #tpu.memory_space<vmem>>, vector<8x96xf32>
    %cst_39 = arith.constant dense<0.000000e+00> : vector<8x96xf32>
    %137 = tpu.matmul %135, %13, %cst_39 {dimension_numbers = #tpu.dot_dimension_numbers<[1], [0], [0], [1], [0, 0, 1, 1], [], []>} : vector<8x32xf32>, vector<32x96xf32>, vector<8x96xf32> -> vector<8x96xf32>
    %138 = vector.extract_strided_slice %136 {offsets = [0, 0], sizes = [8, 32], strides = [1, 1]} : vector<8x96xf32> to vector<8x32xf32>
    %139 = vector.extract_strided_slice %137 {offsets = [0, 0], sizes = [8, 32], strides = [1, 1]} : vector<8x96xf32> to vector<8x32xf32>
    %140 = arith.addf %138, %139 : vector<8x32xf32>
    %141 = arith.negf %140 : vector<8x32xf32>
    %142 = math.exp %141 : vector<8x32xf32>
    %cst_40 = arith.constant 1.000000e+00 : f32
    %143 = vector.broadcast %cst_40 : f32 to vector<8x32xf32>
    %144 = arith.addf %143, %142 : vector<8x32xf32>
    %145 = arith.divf %143, %144 : vector<8x32xf32>
    %146 = vector.extract_strided_slice %136 {offsets = [0, 32], sizes = [8, 32], strides = [1, 1]} : vector<8x96xf32> to vector<8x32xf32>
    %147 = vector.extract_strided_slice %137 {offsets = [0, 32], sizes = [8, 32], strides = [1, 1]} : vector<8x96xf32> to vector<8x32xf32>
    %148 = arith.addf %146, %147 : vector<8x32xf32>
    %149 = arith.negf %148 : vector<8x32xf32>
    %150 = math.exp %149 : vector<8x32xf32>
    %cst_41 = arith.constant 1.000000e+00 : f32
    %151 = vector.broadcast %cst_41 : f32 to vector<8x32xf32>
    %152 = arith.addf %151, %150 : vector<8x32xf32>
    %153 = arith.divf %151, %152 : vector<8x32xf32>
    %154 = vector.extract_strided_slice %136 {offsets = [0, 64], sizes = [8, 32], strides = [1, 1]} : vector<8x96xf32> to vector<8x32xf32>
    %155 = vector.extract_strided_slice %137 {offsets = [0, 64], sizes = [8, 32], strides = [1, 1]} : vector<8x96xf32> to vector<8x32xf32>
    %156 = vector.broadcast %14 : vector<1x32xf32> to vector<8x32xf32>
    %157 = arith.addf %155, %156 : vector<8x32xf32>
    %158 = arith.mulf %145, %157 : vector<8x32xf32>
    %159 = arith.addf %154, %158 : vector<8x32xf32>
    %160 = math.tanh %159 : vector<8x32xf32>
    %cst_42 = arith.constant 1.000000e+00 : f32
    %161 = vector.broadcast %cst_42 : f32 to vector<8x32xf32>
    %162 = arith.subf %161, %153 : vector<8x32xf32>
    %163 = arith.mulf %162, %160 : vector<8x32xf32>
    %164 = arith.mulf %153, %135 : vector<8x32xf32>
    %165 = arith.addf %163, %164 : vector<8x32xf32>
    %c5 = arith.constant 5 : index
    %c0_43 = arith.constant 0 : index
    %166 = tpu.strided_load %arg10[%c5, %c0_43] {strides = array<i32: 8, 1>} : memref<64x96xf32, #tpu.memory_space<vmem>>, vector<8x96xf32>
    %cst_44 = arith.constant dense<0.000000e+00> : vector<8x96xf32>
    %167 = tpu.matmul %165, %13, %cst_44 {dimension_numbers = #tpu.dot_dimension_numbers<[1], [0], [0], [1], [0, 0, 1, 1], [], []>} : vector<8x32xf32>, vector<32x96xf32>, vector<8x96xf32> -> vector<8x96xf32>
    %168 = vector.extract_strided_slice %166 {offsets = [0, 0], sizes = [8, 32], strides = [1, 1]} : vector<8x96xf32> to vector<8x32xf32>
    %169 = vector.extract_strided_slice %167 {offsets = [0, 0], sizes = [8, 32], strides = [1, 1]} : vector<8x96xf32> to vector<8x32xf32>
    %170 = arith.addf %168, %169 : vector<8x32xf32>
    %171 = arith.negf %170 : vector<8x32xf32>
    %172 = math.exp %171 : vector<8x32xf32>
    %cst_45 = arith.constant 1.000000e+00 : f32
    %173 = vector.broadcast %cst_45 : f32 to vector<8x32xf32>
    %174 = arith.addf %173, %172 : vector<8x32xf32>
    %175 = arith.divf %173, %174 : vector<8x32xf32>
    %176 = vector.extract_strided_slice %166 {offsets = [0, 32], sizes = [8, 32], strides = [1, 1]} : vector<8x96xf32> to vector<8x32xf32>
    %177 = vector.extract_strided_slice %167 {offsets = [0, 32], sizes = [8, 32], strides = [1, 1]} : vector<8x96xf32> to vector<8x32xf32>
    %178 = arith.addf %176, %177 : vector<8x32xf32>
    %179 = arith.negf %178 : vector<8x32xf32>
    %180 = math.exp %179 : vector<8x32xf32>
    %cst_46 = arith.constant 1.000000e+00 : f32
    %181 = vector.broadcast %cst_46 : f32 to vector<8x32xf32>
    %182 = arith.addf %181, %180 : vector<8x32xf32>
    %183 = arith.divf %181, %182 : vector<8x32xf32>
    %184 = vector.extract_strided_slice %166 {offsets = [0, 64], sizes = [8, 32], strides = [1, 1]} : vector<8x96xf32> to vector<8x32xf32>
    %185 = vector.extract_strided_slice %167 {offsets = [0, 64], sizes = [8, 32], strides = [1, 1]} : vector<8x96xf32> to vector<8x32xf32>
    %186 = vector.broadcast %14 : vector<1x32xf32> to vector<8x32xf32>
    %187 = arith.addf %185, %186 : vector<8x32xf32>
    %188 = arith.mulf %175, %187 : vector<8x32xf32>
    %189 = arith.addf %184, %188 : vector<8x32xf32>
    %190 = math.tanh %189 : vector<8x32xf32>
    %cst_47 = arith.constant 1.000000e+00 : f32
    %191 = vector.broadcast %cst_47 : f32 to vector<8x32xf32>
    %192 = arith.subf %191, %183 : vector<8x32xf32>
    %193 = arith.mulf %192, %190 : vector<8x32xf32>
    %194 = arith.mulf %183, %165 : vector<8x32xf32>
    %195 = arith.addf %193, %194 : vector<8x32xf32>
    %c6 = arith.constant 6 : index
    %c0_48 = arith.constant 0 : index
    %196 = tpu.strided_load %arg10[%c6, %c0_48] {strides = array<i32: 8, 1>} : memref<64x96xf32, #tpu.memory_space<vmem>>, vector<8x96xf32>
    %cst_49 = arith.constant dense<0.000000e+00> : vector<8x96xf32>
    %197 = tpu.matmul %195, %13, %cst_49 {dimension_numbers = #tpu.dot_dimension_numbers<[1], [0], [0], [1], [0, 0, 1, 1], [], []>} : vector<8x32xf32>, vector<32x96xf32>, vector<8x96xf32> -> vector<8x96xf32>
    %198 = vector.extract_strided_slice %196 {offsets = [0, 0], sizes = [8, 32], strides = [1, 1]} : vector<8x96xf32> to vector<8x32xf32>
    %199 = vector.extract_strided_slice %197 {offsets = [0, 0], sizes = [8, 32], strides = [1, 1]} : vector<8x96xf32> to vector<8x32xf32>
    %200 = arith.addf %198, %199 : vector<8x32xf32>
    %201 = arith.negf %200 : vector<8x32xf32>
    %202 = math.exp %201 : vector<8x32xf32>
    %cst_50 = arith.constant 1.000000e+00 : f32
    %203 = vector.broadcast %cst_50 : f32 to vector<8x32xf32>
    %204 = arith.addf %203, %202 : vector<8x32xf32>
    %205 = arith.divf %203, %204 : vector<8x32xf32>
    %206 = vector.extract_strided_slice %196 {offsets = [0, 32], sizes = [8, 32], strides = [1, 1]} : vector<8x96xf32> to vector<8x32xf32>
    %207 = vector.extract_strided_slice %197 {offsets = [0, 32], sizes = [8, 32], strides = [1, 1]} : vector<8x96xf32> to vector<8x32xf32>
    %208 = arith.addf %206, %207 : vector<8x32xf32>
    %209 = arith.negf %208 : vector<8x32xf32>
    %210 = math.exp %209 : vector<8x32xf32>
    %cst_51 = arith.constant 1.000000e+00 : f32
    %211 = vector.broadcast %cst_51 : f32 to vector<8x32xf32>
    %212 = arith.addf %211, %210 : vector<8x32xf32>
    %213 = arith.divf %211, %212 : vector<8x32xf32>
    %214 = vector.extract_strided_slice %196 {offsets = [0, 64], sizes = [8, 32], strides = [1, 1]} : vector<8x96xf32> to vector<8x32xf32>
    %215 = vector.extract_strided_slice %197 {offsets = [0, 64], sizes = [8, 32], strides = [1, 1]} : vector<8x96xf32> to vector<8x32xf32>
    %216 = vector.broadcast %14 : vector<1x32xf32> to vector<8x32xf32>
    %217 = arith.addf %215, %216 : vector<8x32xf32>
    %218 = arith.mulf %205, %217 : vector<8x32xf32>
    %219 = arith.addf %214, %218 : vector<8x32xf32>
    %220 = math.tanh %219 : vector<8x32xf32>
    %cst_52 = arith.constant 1.000000e+00 : f32
    %221 = vector.broadcast %cst_52 : f32 to vector<8x32xf32>
    %222 = arith.subf %221, %213 : vector<8x32xf32>
    %223 = arith.mulf %222, %220 : vector<8x32xf32>
    %224 = arith.mulf %213, %195 : vector<8x32xf32>
    %225 = arith.addf %223, %224 : vector<8x32xf32>
    %c7 = arith.constant 7 : index
    %c0_53 = arith.constant 0 : index
    %226 = tpu.strided_load %arg10[%c7, %c0_53] {strides = array<i32: 8, 1>} : memref<64x96xf32, #tpu.memory_space<vmem>>, vector<8x96xf32>
    %cst_54 = arith.constant dense<0.000000e+00> : vector<8x96xf32>
    %227 = tpu.matmul %225, %13, %cst_54 {dimension_numbers = #tpu.dot_dimension_numbers<[1], [0], [0], [1], [0, 0, 1, 1], [], []>} : vector<8x32xf32>, vector<32x96xf32>, vector<8x96xf32> -> vector<8x96xf32>
    %228 = vector.extract_strided_slice %226 {offsets = [0, 0], sizes = [8, 32], strides = [1, 1]} : vector<8x96xf32> to vector<8x32xf32>
    %229 = vector.extract_strided_slice %227 {offsets = [0, 0], sizes = [8, 32], strides = [1, 1]} : vector<8x96xf32> to vector<8x32xf32>
    %230 = arith.addf %228, %229 : vector<8x32xf32>
    %231 = arith.negf %230 : vector<8x32xf32>
    %232 = math.exp %231 : vector<8x32xf32>
    %cst_55 = arith.constant 1.000000e+00 : f32
    %233 = vector.broadcast %cst_55 : f32 to vector<8x32xf32>
    %234 = arith.addf %233, %232 : vector<8x32xf32>
    %235 = arith.divf %233, %234 : vector<8x32xf32>
    %236 = vector.extract_strided_slice %226 {offsets = [0, 32], sizes = [8, 32], strides = [1, 1]} : vector<8x96xf32> to vector<8x32xf32>
    %237 = vector.extract_strided_slice %227 {offsets = [0, 32], sizes = [8, 32], strides = [1, 1]} : vector<8x96xf32> to vector<8x32xf32>
    %238 = arith.addf %236, %237 : vector<8x32xf32>
    %239 = arith.negf %238 : vector<8x32xf32>
    %240 = math.exp %239 : vector<8x32xf32>
    %cst_56 = arith.constant 1.000000e+00 : f32
    %241 = vector.broadcast %cst_56 : f32 to vector<8x32xf32>
    %242 = arith.addf %241, %240 : vector<8x32xf32>
    %243 = arith.divf %241, %242 : vector<8x32xf32>
    %244 = vector.extract_strided_slice %226 {offsets = [0, 64], sizes = [8, 32], strides = [1, 1]} : vector<8x96xf32> to vector<8x32xf32>
    %245 = vector.extract_strided_slice %227 {offsets = [0, 64], sizes = [8, 32], strides = [1, 1]} : vector<8x96xf32> to vector<8x32xf32>
    %246 = vector.broadcast %14 : vector<1x32xf32> to vector<8x32xf32>
    %247 = arith.addf %245, %246 : vector<8x32xf32>
    %248 = arith.mulf %235, %247 : vector<8x32xf32>
    %249 = arith.addf %244, %248 : vector<8x32xf32>
    %250 = math.tanh %249 : vector<8x32xf32>
    %cst_57 = arith.constant 1.000000e+00 : f32
    %251 = vector.broadcast %cst_57 : f32 to vector<8x32xf32>
    %252 = arith.subf %251, %243 : vector<8x32xf32>
    %253 = arith.mulf %252, %250 : vector<8x32xf32>
    %254 = arith.mulf %243, %225 : vector<8x32xf32>
    %255 = arith.addf %253, %254 : vector<8x32xf32>
    %256 = tpu.concatenate %45, %75, %105, %135, %165, %195, %225, %255 in 1 : vector<8x32xf32>, vector<8x32xf32>, vector<8x32xf32>, vector<8x32xf32>, vector<8x32xf32>, vector<8x32xf32>, vector<8x32xf32>, vector<8x32xf32> -> vector<8x256xf32>
    %c0_58 = arith.constant 0 : index
    %c0_59 = arith.constant 0 : index
    %257 = vector.load %arg9[%c0_58, %c0_59] : memref<8x256xf32, #tpu.memory_space<vmem>>, vector<8x256xf32>
    tpu.vector_store %arg9[%c0_58, %c0_59], %256 {strides = array<i32>} : memref<8x256xf32, #tpu.memory_space<vmem>>, vector<8x256xf32>,
    return
  }
  func.func @transform_0(%arg0: i32) -> (i32, i32) {
    %c0_i32 = arith.constant 0 : i32
    %c0_i32_0 = arith.constant 0 : i32
    %c0_i32_1 = arith.constant 0 : i32
    return %c0_i32, %c0_i32_0 : i32, i32
  }
  func.func @transform_1(%arg0: i32) -> (i32, i32) {
    %c0_i32 = arith.constant 0 : i32
    %c0_i32_0 = arith.constant 0 : i32
    %c0_i32_1 = arith.constant 0 : i32
    return %c0_i32, %c0_i32_0 : i32, i32
  }
  func.func @transform_2(%arg0: i32) -> (i32, i32) {
    %c0_i32 = arith.constant 0 : i32
    %c0_i32_0 = arith.constant 0 : i32
    %c0_i32_1 = arith.constant 0 : i32
    return %c0_i32, %c0_i32_0 : i32, i32
  }
  func.func @transform_3(%arg0: i32) -> (i32, i32) {
    %c0_i32 = arith.constant 0 : i32
    %c0_i32_0 = arith.constant 0 : i32
    %c0_i32_1 = arith.constant 0 : i32
    return %c0_i32, %c0_i32_0 : i32, i32
  }
  func.func @transform_4(%arg0: i32) -> (i32, i32) {
    %c0_i32 = arith.constant 0 : i32
    %c0_i32_0 = arith.constant 0 : i32
    %c0_i32_1 = arith.constant 0 : i32
    return %c0_i32, %c0_i32_0 : i32, i32
  }
  func.func @transform_5(%arg0: i32) -> (i32, i32) {
    %c0_i32 = arith.constant 0 : i32
    %c0_i32_0 = arith.constant 0 : i32
    %c0_i32_1 = arith.constant 0 : i32
    return %c0_i32, %c0_i32_0 : i32, i32
  }
  func.func @transform_6(%arg0: i32) -> (i32, i32) {
    %c0_i32 = arith.constant 0 : i32
    %c0_i32_0 = arith.constant 0 : i32
    %c0_i32_1 = arith.constant 0 : i32
    return %c0_i32, %c0_i32_0 : i32, i32
  }
  func.func @transform_7(%arg0: i32) -> (i32, i32) {
    %c0_i32 = arith.constant 0 : i32
    %c0_i32_0 = arith.constant 0 : i32
    %c0_i32_1 = arith.constant 0 : i32
    return %c0_i32, %c0_i32_0 : i32, i32
  }
  func.func @transform_8(%arg0: i32) -> (i32, i32) {
    %c0_i32 = arith.constant 0 : i32
    %c0_i32_0 = arith.constant 0 : i32
    %c0_i32_1 = arith.constant 0 : i32
    return %c0_i32, %c0_i32_0 : i32, i32
  }
}

</mosaic_0001>

<bundles_post_ra>
// kernel: _gru_pallas.1
= control target key start
LH: loop header
LB: loop body
LE: loop exit
PB: predicated region body
PF: predicated region fallthrough
CT: control target
= control target key end

     0   :  { %vm125_vm0 = vcmask 1046528   ;;  %vm100_vm1 = vcmask 121856   ;;  %v907_v6 = vmov 0   ;;  %vm200_vm2 = vcmask 261120   ;;  %s1185_s0 = inlined_call_operand.vmem [shape: f32[64,15], index: 0, kind: input, shape index: {}]   ;;  %s1186_s1 = inlined_call_operand.vmem [shape: f32[64,1], index: 1, kind: input, shape index: {}]   ;;  %s1187_s2 = inlined_call_operand.vmem [shape: f32[8,32], index: 2, kind: input, shape index: {}]   ;;  %s1188_s3 = inlined_call_operand.vmem [shape: f32[15,96], index: 3, kind: input, shape index: {}]   ;;  %s1189_s4 = inlined_call_operand.vmem [shape: f32[1,96], index: 4, kind: input, shape index: {}]   ;;  %s1190_s5 = inlined_call_operand.vmem [shape: f32[32,96], index: 5, kind: input, shape index: {}]   ;;  %s1191_s6 = inlined_call_operand.vmem [shape: f32[1,96], index: 6, kind: input, shape index: {}]   ;;  %s1192_s7 = inlined_call_operand.vmem [shape: f32[1,32], index: 7, kind: input, shape index: {}]   ;;  %s1193_s8 = inlined_call_operand.hbm [shape: f32[8,256], index: 8, kind: output, shape index: {}]  }
   0x1   :  { %v39_v0 = vld [vmem:[%s1188_s3 + $0x8] sm:$0x7f]  ;;  %v963_v1 = vld [vmem:[%s1190_s5 + $0x18] sm:$0xff]  ;;  %v38_v2 = vld [vmem:[%s1188_s3] sm:$0xff]  ;;  %829 = vset.pattern.permute.xlu2 %v907_v6  ;;  %828 = vset.pattern.permute.xlu1 %v907_v6 }
   0x2   :  { %795 = vmatpush.msk.msra.mxu0 %vm125_vm0, %v39_v0  ;;  %820 = vmatpush.msk.msra.mxu3 %vm125_vm0, %v39_v0  ;;  %v971_v3 = vld [vmem:[%s1190_s5 + $0x10] sm:$0xff]  ;;  %v30_v4 = vld [vmem:[%s1185_s0] sm:$0xff]  ;;  %v35_v5 = vld [vmem:[%s1185_s0 + $0x28] sm:$0xff] }
   0x3   :  { %216 = vmatpush.msra.mxu1 %v963_v1  ;;  %v983_v7 = vld [vmem:[%s1190_s5 + $0x8] sm:$0xff]  ;;  %v44_v8 = vld [vmem:[%s1186_s1 + $0x20] sm:$0xff]  ;;  %v42_v10 = vld [vmem:[%s1186_s1 + $0x10] sm:$0xff]  ;;  %827 = vset.pattern.permute.xlu0 %v907_v6 }
   0x4   :  { %144 = vmatpush.msra.mxu0 %v38_v2  ;;  %821 = vmatpush.msra.mxu3 %v38_v2  ;;  %v994_v9 = vld [vmem:[%s1190_s5] sm:$0xff]  ;;  %v31_v13 = vld [vmem:[%s1185_s0 + $0x8] sm:$0xff] }
   0x5   :  { %217 = vmatpush.msra.mxu1 %v971_v3  ;;  %796 = vmatmul.msk.f32.vlgmr.msra.gmra.mxu0 %vm100_vm1, %v30_v4  ;;  %v40_v11 = vld [vmem:[%s1186_s1] sm:$0xff] }
   0x6   :  { %801 = vmatmul.msk.f32.vlgmr.msra.gmra.mxu3 %vm100_vm1, %v35_v5  ;;  %71 = vperm.xlu2 %829, %v44_v8   ;;  %v1006_v12 = vld [vmem:[%s1187_s2] sm:$0xff] }
   0x7   :  { %218 = vmatpush.msra.mxu1 %v983_v7  ;;  %61 = vperm.xlu1 %828, %v42_v10  }
   0x8   :  { %51 = vperm.xlu0 %827, %v40_v11   ;;  %293 = vmatpush.msra.mxu2 %v963_v1 }
   0x9   :  { %219 = vmatpush.msra.mxu1 %v994_v9 }
   0xa   :  { %804 = vmatmul.msk.f32.vlgmr.msra.gmra.mxu1 %vm200_vm2, %v1006_v12 }
   0xb   :  { %13 = vsyncpa [#allocation4], 0  ;;  %v36_v14 = vld [vmem:[%s1185_s0 + $0x30] sm:$0xff]  ;;  %v45_v15 = vld [vmem:[%s1186_s1 + $0x28] sm:$0xff]  ;;  %362 = vmatpush.msrb.mxu3 %v963_v1  ;;  %431 = vmatpush.msrb.mxu1 %v963_v1  ;;  %vm182_vm3 = vcmask 785408   ;;  %s786_s9 = sshll.u32 %s1193_s8, 4  ;;  %s787_s9 = int_to_ptr.hbm [resolvable:$true] %s786_s9 }
   0xc   :  { %294 = vmatpush.msra.mxu2 %v971_v3  ;;  %v43_v16 = vld [vmem:[%s1186_s1 + $0x18] sm:$0xff]  ;;  %v41_v17 = vld [vmem:[%s1186_s1 + $0x8] sm:$0xff]  ;;  %v32_v18 = vld [vmem:[%s1185_s0 + $0x10] sm:$0xff] }
   0xd   :  { %797 = vmatmul.msk.f32.gmra.mxu0 %vm100_vm1, %v31_v13  ;;  %363 = vmatpush.msrb.mxu3 %v971_v3  ;;  %v830_v19 = vld [vmem:[%s1192_s7] ss:$0 sm:$0xff]  ;;  %v37_v20 = vld [vmem:[%s1185_s0 + $0x38] sm:$0xff]  ;;  %s908_s7 = smov 64   ;;  %v46_v22 = vld [vmem:[%s1186_s1 + $0x30] sm:$0xff] }
   0xe   :  { %802 = vmatmul.msk.f32.gmra.mxu3 %vm100_vm1, %v36_v14  ;;  %76 = vperm.xlu2 %829, %v45_v15   ;;  %v47_v21 = vld [vmem:[%s1186_s1 + $0x38] sm:$0xff]  ;;  %v34_v24 = vld [vmem:[%s1185_s0 + $0x20] sm:$0xff] }
   0xf   :  { %295 = vmatpush.msra.mxu2 %v983_v7  ;;  %364 = vmatpush.msrb.mxu3 %v983_v7  ;;  %v33_v23 = vld [vmem:[%s1185_s0 + $0x18] sm:$0xff]  ;;  %v831_v27 = vld [vmem:[%s1189_s4] ss:$0 sm:$0xff]  ;;  %s909_s0 = smov 32   ;;  %s910_s4 = smov 96  }
  0x10   :  { %66 = vperm.xlu1 %828, %v43_v16   ;;  %432 = vmatpush.msrb.mxu1 %v971_v3  ;;  %v832_v32 = vld [vmem:[%s1191_s6] ss:$0 sm:$0xff]  ;;  %s911_s6 = smov [#allocation3]  }
  0x11   :  { %56 = vperm.xlu0 %827, %v41_v17   ;;  %296 = vmatpush.msra.mxu2 %v994_v9  ;;  %s784_s29 = sshll.u32 %s911_s6, 4  ;;  %s785_s29 = int_to_ptr.vmem [resolvable:$true] %s784_s29 }
  0x12   :  { %365 = vmatpush.msrb.mxu3 %v994_v9  ;;  %433 = vmatpush.msrb.mxu1 %v983_v7 }
  0x13   :  { %500 = vmatpush.msrb.mxu2 %v963_v1 }
  0x14   :  { %569 = vmatpush.msra.mxu3 %v963_v1  ;;  %434 = vmatpush.msrb.mxu1 %v994_v9 }
  0x15   :  { %798 = vmatmul.msk.f32.gmra.mxu0 %vm100_vm1, %v32_v18  ;;  %501 = vmatpush.msrb.mxu2 %v971_v3 }
  0x16   :  { %803 = vmatmul.msk.f32.gmra.mxu3 %vm100_vm1, %v37_v20  ;;  %246 = vrot.lane.b32.xlu2 %v830_v19, %s908_s7 }
  0x17   :  { %502 = vmatpush.msrb.mxu2 %v983_v7  ;;  %570 = vmatpush.msra.mxu3 %v971_v3 }
  0x18   :  { %86 = vperm.xlu1 %828, %v47_v21   ;;  %638 = vmatpush.msra.mxu1 %v963_v1 }
  0x19   :  { %81 = vperm.xlu0 %827, %v46_v22   ;;  %503 = vmatpush.msrb.mxu2 %v994_v9 }
  0x1a   :  { %571 = vmatpush.msra.mxu3 %v983_v7  ;;  %639 = vmatpush.msra.mxu1 %v971_v3 }
  0x1c   :  { %572 = vmatpush.msra.mxu3 %v994_v9  ;;  %640 = vmatpush.msra.mxu1 %v983_v7 }
  0x1d   :  { %799 = vmatmul.msk.f32.gmra.mxu0 %vm100_vm1, %v33_v23 }
  0x1e   :  { %641 = vmatpush.msra.mxu1 %v994_v9 }
  0x25   :  { %800 = vmatmul.msk.f32.gmra.mxu0 %vm100_vm1, %v34_v24 }
  0x60   :  { %v72_v25 = vpop.permute.xlu2 %71 }
  0x61   :  { %v96_v4 = vmul.f32 %v831_v27, %v72_v25 }
  0x68   :  { %v77_v28 = vpop.permute.xlu2 %76 }
  0x69   :  { %v97_v39 = vmul.f32 %v831_v27, %v77_v28 }
  0x70   :  { %v1084_v35 = vpop.permute.xlu2 %246 }
  0x79   :  { %v62_v29 = vpop.permute.xlu1 %61 }
  0x7a   :  { %v52_v26 = vpop.permute.xlu0 %51  ;;  %v94_v50 = vmul.f32 %v831_v27, %v62_v29 }
  0x7b   :  { %v92_v30 = vmul.f32 %v831_v27, %v52_v26 }
  0x82   :  { %v146_v31 = vpop.f32.mrf.mxu0  ;;  %v67_v42 = vpop.permute.xlu1 %66 }
  0x83   :  { %v147_v33 = vadd.f32 %v146_v31, %v92_v30  ;;  %v57_v34 = vpop.permute.xlu0 %56  ;;  %v95_v59 = vmul.f32 %v831_v27, %v67_v42 }
  0x84   :  { %v93_v38 = vmul.f32 %v831_v27, %v57_v34 }
  0x85   :  { %v174_v36 = vadd.f32 %v832_v32, %v147_v33 }
  0x87   :  { %v221_v37 = vpop.f32.mrf.mxu1  ;;  %183 = vst.msk [vmem:[#allocation2] sm:$0xff] %vm182_vm3, %v174_v36 }
  0x88   :  { %v249_v40 = vadd.f32 %v1084_v35, %v221_v37 }
  0x89   :  { %v161_v41 = vpop.f32.mrf.mxu3 }
  0x8a   :  { %v162_v43 = vadd.f32 %v161_v41, %v97_v39  ;;  %251 = vrot.lane.b32.xlu0 %v249_v40, %s908_s7  ;;  %v149_v44 = vpop.f32.mrf.mxu0  ;;  %v87_v55 = vpop.permute.xlu1 %86 }
  0x8b   :  { %v150_v45 = vadd.f32 %v149_v44, %v93_v38  ;;  %v82_v46 = vpop.permute.xlu0 %81  ;;  %v99_v58 = vmul.f32 %v831_v27, %v87_v55 }
  0x8c   :  { %v179_v47 = vadd.f32 %v832_v32, %v162_v43  ;;  %v98_v49 = vmul.f32 %v831_v27, %v82_v46 }
  0x8d   :  { %v175_v48 = vadd.f32 %v832_v32, %v150_v45 }
  0x8e   :  { %188 = vst.msk [vmem:[#allocation2 + $0x28] sm:$0xff] %vm182_vm3, %v179_v47 }
  0x8f   :  { %184 = vst.msk [vmem:[#allocation2 + $0x8] sm:$0xff] %vm182_vm3, %v175_v48 }
  0x91   :  { %v164_v51 = vpop.f32.mrf.mxu3 }
  0x92   :  { %267 = vrot.lane.b32.xlu0 %v1006_v12, %s909_s0  ;;  %v152_v52 = vpop.f32.mrf.mxu0  ;;  %v165_v53 = vadd.f32 %v164_v51, %v98_v49 }
  0x93   :  { %v153_v54 = vadd.f32 %v152_v52, %v94_v50 }
  0x94   :  { %v180_v56 = vadd.f32 %v832_v32, %v165_v53 }
  0x95   :  { %v176_v57 = vadd.f32 %v832_v32, %v153_v54 }
  0x96   :  { %189 = vst.msk [vmem:[#allocation2 + $0x30] sm:$0xff] %vm182_vm3, %v180_v56 }
  0x97   :  { %185 = vst.msk [vmem:[#allocation2 + $0x10] sm:$0xff] %vm182_vm3, %v176_v57 }
  0x99   :  { %v167_v60 = vpop.f32.mrf.mxu3 }
  0x9a   :  { %v155_v61 = vpop.f32.mrf.mxu0  ;;  %v168_v62 = vadd.f32 %v167_v60, %v99_v58 }
  0x9b   :  { %v156_v63 = vadd.f32 %v155_v61, %v95_v59 }
  0x9c   :  { %v181_v0 = vadd.f32 %v832_v32, %v168_v62 }
  0x9d   :  { %v177_v2 = vadd.f32 %v832_v32, %v156_v63 }
  0x9e   :  { %190 = vst.msk [vmem:[#allocation2 + $0x38] sm:$0xff] %vm182_vm3, %v181_v0 }
  0x9f   :  { %186 = vst.msk [vmem:[#allocation2 + $0x18] sm:$0xff] %vm182_vm3, %v177_v2 }
  0xa2   :  { %v158_v5 = vpop.f32.mrf.mxu0 }
  0xa3   :  { %v159_v6 = vadd.f32 %v158_v5, %v96_v4 }
  0xa5   :  { %v178_v8 = vadd.f32 %v832_v32, %v159_v6 }
  0xa6   :  { %v197_v10 = vld [vmem:[#allocation2] ss:$8 sm:$0xf]  ;;  %v273_v42 = vld [vmem:[#allocation2 + $0x1] ss:$8 sm:$0xf] }
  0xa7   :  { %187 = vst.msk [vmem:[#allocation2 + $0x20] sm:$0xff] %vm182_vm3, %v178_v8  ;;  %v342_v6 = vld [vmem:[#allocation2 + $0x2] ss:$8 sm:$0xf] }
  0xae   :  { %v198_v11 = vld [vmem:[#allocation2] ss:$8 sm:$0xf0]  ;;  %v274_v43 = vld [vmem:[#allocation2 + $0x1] ss:$8 sm:$0xf0] }
  0xaf   :  { %v199_v12 = vor.u32 %v198_v11, %v197_v10  ;;  %v275_v44 = vor.u32 %v274_v43, %v273_v42  ;;  %v343_v8 = vld [vmem:[#allocation2 + $0x2] ss:$8 sm:$0xf0] }
  0xb0   :  { %v344_v10 = vor.u32 %v343_v8, %v342_v6  ;;  %v481_v6 = vld [vmem:[#allocation2 + $0x4] ss:$8 sm:$0xf0] }
  0xb1   :  { %v224_v13 = vadd.f32 %v221_v37, %v199_v12 }
  0xb3   :  { %v805_v14 = vmul.f32 -1.442695, %v224_v13 }
  0xb5   :  { %833 = vpow2.f32 %v805_v14 }
  0xbb   :  { %v834_v15 = vpop.eup %833 }
  0xbc   :  { %v228_v16 = vadd.f32 1.0, %v834_v15 }
  0xbe   :  { %835 = vrcp.f32 %v228_v16  ;;  %v240_v22 = vand.u32 2147483648, %v228_v16  ;;  %vm234_vm5 = vweird.f32 %v228_v16  ;;  %v238_v23 = vand.u32 2147483647, %v228_v16 }
  0xc0   :  { %v241_v25 = vor.u32 1.1754944e-38, %v240_v22  ;;  %vm239_vm7 = vcmp.eq.f32.partialorder %v238_v23, 8.507059e+37 }
  0xc4   :  { %v836_v17 = vpop.eup %835 }
  0xc5   :  { %v230_v18 = vmul.f32 %v836_v17, %v228_v16  ;;  %vm235_vm4 = vweird.f32 %v836_v17 }
  0xc6   :  { %vm236_vm6 = vmor %vm234_vm5, %vm235_vm4 }
  0xc7   :  { %v231_v19 = vsub.f32 1.0, %v230_v18 }
  0xc9   :  { %v232_v20 = vmul.f32 %v836_v17, %v231_v19 }
  0xcb   :  { %v233_v21 = vadd.f32 %v836_v17, %v232_v20 }
  0xcd   :  { %v237_v24 = vsel %vm236_vm6, %v836_v17, %v233_v21 }
  0xce   :  { %v242_v27 = vsel %vm239_vm7, %v241_v25, %v237_v24 }
  0xcf   :  { %v261_v33 = vsub.f32 1.0, %v242_v27 }
  0xfc   :  { %v252_v26 = vpop.permute.xlu0 %251 }
  0xfd   :  { %v254_v28 = vmul.f32 %v252_v26, %v242_v27 }
  0xff   :  { %256 = vrot.lane.b32.xlu1 %v254_v28, %s908_s7 }
 0x104   :  { %v268_v32 = vpop.permute.xlu0 %267 }
 0x105   :  { %v270_v36 = vmul.f32 %v268_v32, %v242_v27 }
 0x171   :  { %v257_v29 = vpop.permute.xlu1 %256 }
 0x172   :  { %v259_v30 = vadd.f32 %v257_v29, %v199_v12 }
 0x174   :  { %837 = vtanh.f32 %v259_v30 }
 0x17a   :  { %v838_v31 = vpop.eup %837 }
 0x17b   :  { %263 = vrot.lane.b32.xlu2 %v838_v31, %s910_s4 }
 0x1d5   :  { %v264_v34 = vpop.permute.xlu2 %263 }
 0x1d6   :  { %v266_v37 = vmul.f32 %v264_v34, %v261_v33 }
 0x1d8   :  { %v271_v38 = vadd.f32 %v270_v36, %v266_v37 }
 0x1da   :  { %277 = vrot.lane.b32.xlu1 %v271_v38, %s910_s4 }
 0x24c   :  { %v1101_v39 = vpop.permute.xlu1 %277 }
 0x24d   :  { %806 = vmatmul.msk.f32.vlgmr.msra.gmra.mxu2 %vm200_vm2, %v1101_v39 }
 0x24e   :  { %707 = vmatpush.msra.mxu2 %v963_v1 }
 0x250   :  { %708 = vmatpush.msra.mxu2 %v971_v3 }
 0x252   :  { %709 = vmatpush.msra.mxu2 %v983_v7 }
 0x254   :  { %710 = vmatpush.msra.mxu2 %v994_v9 }
 0x2d0   :  { %v298_v40 = vpop.f32.mrf.mxu2 }
 0x2d1   :  { %v321_v41 = vadd.f32 %v298_v40, %v1084_v35  ;;  %v301_v45 = vadd.f32 %v298_v40, %v275_v44  ;;  %v411_v40 = vld [vmem:[#allocation2 + $0x3] ss:$8 sm:$0xf] }
 0x2d3   :  { %323 = vrot.lane.b32.xlu2 %v321_v41, %s908_s7  ;;  %v807_v46 = vmul.f32 -1.442695, %v301_v45  ;;  %v412_v41 = vld [vmem:[#allocation2 + $0x3] ss:$8 sm:$0xf0] }
 0x2d4   :  { %v413_v42 = vor.u32 %v412_v41, %v411_v40  ;;  %v549_v40 = vld [vmem:[#allocation2 + $0x5] ss:$8 sm:$0xf] }
 0x2d5   :  { %839 = vpow2.f32 %v807_v46  ;;  %v550_v41 = vld [vmem:[#allocation2 + $0x5] ss:$8 sm:$0xf0] }
 0x2db   :  { %v840_v47 = vpop.eup %839 }
 0x2dc   :  { %v305_v48 = vadd.f32 1.0, %v840_v47 }
 0x2de   :  { %841 = vrcp.f32 %v305_v48  ;;  %v317_v9 = vand.u32 2147483648, %v305_v48  ;;  %vm311_vm9 = vweird.f32 %v305_v48  ;;  %v315_v51 = vand.u32 2147483647, %v305_v48 }
 0x2e0   :  { %v318_v53 = vor.u32 1.1754944e-38, %v317_v9  ;;  %vm316_vm11 = vcmp.eq.f32.partialorder %v315_v51, 8.507059e+37 }
 0x2e4   :  { %v842_v1 = vpop.eup %841 }
 0x2e5   :  { %v307_v3 = vmul.f32 %v842_v1, %v305_v48  ;;  %vm312_vm8 = vweird.f32 %v842_v1 }
 0x2e6   :  { %vm313_vm10 = vmor %vm311_vm9, %vm312_vm8 }
 0x2e7   :  { %v308_v49 = vsub.f32 1.0, %v307_v3 }
 0x2e9   :  { %v309_v7 = vmul.f32 %v842_v1, %v308_v49 }
 0x2eb   :  { %v310_v50 = vadd.f32 %v842_v1, %v309_v7 }
 0x2ed   :  { %v314_v52 = vsel %vm313_vm10, %v842_v1, %v310_v50 }
 0x2ee   :  { %v319_v55 = vsel %vm316_vm11, %v318_v53, %v314_v52 }
 0x2ef   :  { %v333_v60 = vsub.f32 1.0, %v319_v55  ;;  %v339_v62 = vmul.f32 %v319_v55, %v271_v38 }
 0x32d   :  { %v324_v54 = vpop.permute.xlu2 %323 }
 0x32e   :  { %v326_v56 = vmul.f32 %v324_v54, %v319_v55 }
 0x330   :  { %328 = vrot.lane.b32.xlu0 %v326_v56, %s908_s7 }
 0x3a2   :  { %v329_v57 = vpop.permute.xlu0 %328 }
 0x3a3   :  { %v331_v58 = vadd.f32 %v329_v57, %v275_v44 }
 0x3a5   :  { %843 = vtanh.f32 %v331_v58 }
 0x3ab   :  { %v844_v59 = vpop.eup %843 }
 0x3ac   :  { %335 = vrot.lane.b32.xlu1 %v844_v59, %s910_s4 }
 0x41e   :  { %v336_v61 = vpop.permute.xlu1 %335 }
 0x41f   :  { %v338_v63 = vmul.f32 %v336_v61, %v333_v60 }
 0x421   :  { %v1113_v0 = vadd.f32 %v339_v62, %v338_v63 }
 0x423   :  { %346 = vrot.lane.b32.xlu2 %v1113_v0, %s910_s4 }
 0x47d   :  { %v347_v2 = vpop.permute.xlu2 %346 }
 0x47e   :  { %808 = vmatmul.msk.f32.vlgmr.msrb.gmra.mxu3 %vm200_vm2, %v347_v2 }
 0x501   :  { %v367_v4 = vpop.f32.mrf.mxu3 }
 0x502   :  { %v390_v5 = vadd.f32 %v367_v4, %v1084_v35  ;;  %v370_v11 = vadd.f32 %v367_v4, %v344_v10 }
 0x504   :  { %392 = vrot.lane.b32.xlu0 %v390_v5, %s908_s7  ;;  %v809_v12 = vmul.f32 -1.442695, %v370_v11  ;;  %v480_v5 = vld [vmem:[#allocation2 + $0x4] ss:$8 sm:$0xf] }
 0x505   :  { %v482_v8 = vor.u32 %v481_v6, %v480_v5  ;;  %v618_v6 = vld [vmem:[#allocation2 + $0x6] ss:$8 sm:$0xf] }
 0x506   :  { %845 = vpow2.f32 %v809_v12 }
 0x50c   :  { %v846_v13 = vpop.eup %845 }
 0x50d   :  { %v374_v14 = vadd.f32 1.0, %v846_v13 }
 0x50f   :  { %847 = vrcp.f32 %v374_v14  ;;  %v386_v20 = vand.u32 2147483648, %v374_v14  ;;  %vm380_vm13 = vweird.f32 %v374_v14  ;;  %v384_v21 = vand.u32 2147483647, %v374_v14 }
 0x511   :  { %v387_v23 = vor.u32 1.1754944e-38, %v386_v20  ;;  %vm385_vm15 = vcmp.eq.f32.partialorder %v384_v21, 8.507059e+37 }
 0x515   :  { %v848_v15 = vpop.eup %847 }
 0x516   :  { %v376_v16 = vmul.f32 %v848_v15, %v374_v14  ;;  %vm381_vm12 = vweird.f32 %v848_v15 }
 0x517   :  { %vm382_vm14 = vmor %vm380_vm13, %vm381_vm12 }
 0x518   :  { %v377_v17 = vsub.f32 1.0, %v376_v16 }
 0x51a   :  { %v378_v18 = vmul.f32 %v848_v15, %v377_v17 }
 0x51c   :  { %v379_v19 = vadd.f32 %v848_v15, %v378_v18 }
 0x51e   :  { %v383_v22 = vsel %vm382_vm14, %v848_v15, %v379_v19 }
 0x51f   :  { %v388_v25 = vsel %vm385_vm15, %v387_v23, %v383_v22 }
 0x520   :  { %v402_v30 = vsub.f32 1.0, %v388_v25  ;;  %v408_v32 = vmul.f32 %v388_v25, %v1113_v0 }
 0x576   :  { %v393_v24 = vpop.permute.xlu0 %392 }
 0x577   :  { %v395_v26 = vmul.f32 %v393_v24, %v388_v25 }
 0x579   :  { %397 = vrot.lane.b32.xlu1 %v395_v26, %s908_s7 }
 0x5eb   :  { %v398_v27 = vpop.permute.xlu1 %397 }
 0x5ec   :  { %v400_v28 = vadd.f32 %v398_v27, %v344_v10 }
 0x5ee   :  { %849 = vtanh.f32 %v400_v28 }
 0x5f4   :  { %v850_v29 = vpop.eup %849 }
 0x5f5   :  { %404 = vrot.lane.b32.xlu2 %v850_v29, %s910_s4 }
 0x64f   :  { %v405_v31 = vpop.permute.xlu2 %404 }
 0x650   :  { %v407_v33 = vmul.f32 %v405_v31, %v402_v30 }
 0x652   :  { %v1123_v34 = vadd.f32 %v408_v32, %v407_v33 }
 0x654   :  { %415 = vrot.lane.b32.xlu0 %v1123_v34, %s910_s4 }
 0x6c6   :  { %v416_v36 = vpop.permute.xlu0 %415 }
 0x6c7   :  { %810 = vmatmul.msk.f32.vlgmr.msrb.gmra.mxu1 %vm200_vm2, %v416_v36 }
 0x744   :  { %v436_v37 = vpop.f32.mrf.mxu1 }
 0x745   :  { %v459_v38 = vadd.f32 %v436_v37, %v1084_v35  ;;  %v439_v43 = vadd.f32 %v436_v37, %v413_v42 }
 0x747   :  { %461 = vrot.lane.b32.xlu1 %v459_v38, %s908_s7  ;;  %v811_v44 = vmul.f32 -1.442695, %v439_v43 }
 0x749   :  { %851 = vpow2.f32 %v811_v44 }
 0x74f   :  { %v852_v45 = vpop.eup %851 }
 0x750   :  { %v443_v46 = vadd.f32 1.0, %v852_v45 }
 0x752   :  { %853 = vrcp.f32 %v443_v46  ;;  %v455_v7 = vand.u32 2147483648, %v443_v46  ;;  %vm449_vm1 = vweird.f32 %v443_v46  ;;  %v453_v50 = vand.u32 2147483647, %v443_v46 }
 0x754   :  { %v456_v51 = vor.u32 1.1754944e-38, %v455_v7  ;;  %vm454_vm5 = vcmp.eq.f32.partialorder %v453_v50, 8.507059e+37 }
 0x758   :  { %v854_v47 = vpop.eup %853 }
 0x759   :  { %v445_v48 = vmul.f32 %v854_v47, %v443_v46  ;;  %vm450_vm0 = vweird.f32 %v854_v47 }
 0x75a   :  { %vm451_vm4 = vmor %vm449_vm1, %vm450_vm0 }
 0x75b   :  { %v446_v1 = vsub.f32 1.0, %v445_v48 }
 0x75d   :  { %v447_v3 = vmul.f32 %v854_v47, %v446_v1 }
 0x75f   :  { %v448_v49 = vadd.f32 %v854_v47, %v447_v3 }
 0x761   :  { %v452_v9 = vsel %vm451_vm4, %v854_v47, %v448_v49 }
 0x762   :  { %v457_v53 = vsel %vm454_vm5, %v456_v51, %v452_v9 }
 0x763   :  { %v471_v58 = vsub.f32 1.0, %v457_v53  ;;  %v477_v60 = vmul.f32 %v457_v53, %v1123_v34 }
 0x7b9   :  { %v462_v52 = vpop.permute.xlu1 %461 }
 0x7ba   :  { %v464_v54 = vmul.f32 %v462_v52, %v457_v53 }
 0x7bc   :  { %466 = vrot.lane.b32.xlu2 %v464_v54, %s908_s7 }
 0x816   :  { %v467_v55 = vpop.permute.xlu2 %466 }
 0x817   :  { %v469_v56 = vadd.f32 %v467_v55, %v413_v42  ;;  %v551_v42 = vor.u32 %v550_v41, %v549_v40 }
 0x819   :  { %855 = vtanh.f32 %v469_v56 }
 0x81f   :  { %v856_v57 = vpop.eup %855 }
 0x820   :  { %473 = vrot.lane.b32.xlu0 %v856_v57, %s910_s4 }
 0x892   :  { %v474_v59 = vpop.permute.xlu0 %473 }
 0x893   :  { %v476_v61 = vmul.f32 %v474_v59, %v471_v58 }
 0x895   :  { %v1133_v62 = vadd.f32 %v477_v60, %v476_v61 }
 0x897   :  { %484 = vrot.lane.b32.xlu1 %v1133_v62, %s910_s4 }
 0x909   :  { %v485_v63 = vpop.permute.xlu1 %484 }
 0x90a   :  { %812 = vmatmul.msk.f32.vlgmr.msrb.gmra.mxu2 %vm200_vm2, %v485_v63 }
 0x98d   :  { %v505_v2 = vpop.f32.mrf.mxu2 }
 0x98e   :  { %v528_v4 = vadd.f32 %v505_v2, %v1084_v35  ;;  %v508_v10 = vadd.f32 %v505_v2, %v482_v8 }
 0x990   :  { %530 = vrot.lane.b32.xlu2 %v528_v4, %s908_s7  ;;  %v813_v11 = vmul.f32 -1.442695, %v508_v10 }
 0x992   :  { %857 = vpow2.f32 %v813_v11 }
 0x998   :  { %v858_v12 = vpop.eup %857 }
 0x999   :  { %v512_v13 = vadd.f32 1.0, %v858_v12 }
 0x99b   :  { %859 = vrcp.f32 %v512_v13  ;;  %v524_v19 = vand.u32 2147483648, %v512_v13  ;;  %vm518_vm7 = vweird.f32 %v512_v13  ;;  %v522_v20 = vand.u32 2147483647, %v512_v13 }
 0x99d   :  { %v525_v22 = vor.u32 1.1754944e-38, %v524_v19  ;;  %vm523_vm9 = vcmp.eq.f32.partialorder %v522_v20, 8.507059e+37 }
 0x9a1   :  { %v860_v14 = vpop.eup %859 }
 0x9a2   :  { %v514_v15 = vmul.f32 %v860_v14, %v512_v13  ;;  %vm519_vm6 = vweird.f32 %v860_v14 }
 0x9a3   :  { %vm520_vm8 = vmor %vm518_vm7, %vm519_vm6 }
 0x9a4   :  { %v515_v16 = vsub.f32 1.0, %v514_v15 }
 0x9a6   :  { %v516_v17 = vmul.f32 %v860_v14, %v515_v16 }
 0x9a8   :  { %v517_v18 = vadd.f32 %v860_v14, %v516_v17 }
 0x9aa   :  { %v521_v21 = vsel %vm520_vm8, %v860_v14, %v517_v18  ;;  %vm771_vm8 = vcmask 523264  }
 0x9ab   :  { %v526_v24 = vsel %vm523_vm9, %v525_v22, %v521_v21 }
 0x9ac   :  { %v540_v29 = vsub.f32 1.0, %v526_v24  ;;  %v546_v31 = vmul.f32 %v526_v24, %v1133_v62 }
 0x9ea   :  { %v531_v23 = vpop.permute.xlu2 %530 }
 0x9eb   :  { %v533_v25 = vmul.f32 %v531_v23, %v526_v24 }
 0x9ed   :  { %535 = vrot.lane.b32.xlu0 %v533_v25, %s908_s7 }
 0xa5f   :  { %v536_v26 = vpop.permute.xlu0 %535 }
 0xa60   :  { %v538_v27 = vadd.f32 %v536_v26, %v482_v8  ;;  %v619_v8 = vld [vmem:[#allocation2 + $0x6] ss:$8 sm:$0xf0] }
 0xa61   :  { %v620_v10 = vor.u32 %v619_v8, %v618_v6 }
 0xa62   :  { %861 = vtanh.f32 %v538_v27 }
 0xa68   :  { %v862_v28 = vpop.eup %861 }
 0xa69   :  { %542 = vrot.lane.b32.xlu1 %v862_v28, %s910_s4 }
 0xadb   :  { %v543_v30 = vpop.permute.xlu1 %542 }
 0xadc   :  { %v545_v32 = vmul.f32 %v543_v30, %v540_v29 }
 0xade   :  { %v547_v33 = vadd.f32 %v546_v31, %v545_v32 }
 0xae0   :  { %553 = vrot.lane.b32.xlu2 %v547_v33, %s910_s4 }
 0xb3a   :  { %v1144_v36 = vpop.permute.xlu2 %553 }
 0xb3b   :  { %814 = vmatmul.msk.f32.vlgmr.msra.gmra.mxu3 %vm200_vm2, %v1144_v36 }
 0xbbe   :  { %v574_v37 = vpop.f32.mrf.mxu3 }
 0xbbf   :  { %v597_v38 = vadd.f32 %v574_v37, %v1084_v35  ;;  %v577_v43 = vadd.f32 %v574_v37, %v551_v42 }
 0xbc1   :  { %599 = vrot.lane.b32.xlu0 %v597_v38, %s908_s7  ;;  %v815_v44 = vmul.f32 -1.442695, %v577_v43  ;;  %v688_v43 = vld [vmem:[#allocation2 + $0x7] ss:$8 sm:$0xf0] }
 0xbc3   :  { %863 = vpow2.f32 %v815_v44 }
 0xbc9   :  { %v864_v45 = vpop.eup %863 }
 0xbca   :  { %v581_v46 = vadd.f32 1.0, %v864_v45 }
 0xbcc   :  { %865 = vrcp.f32 %v581_v46  ;;  %v593_v7 = vand.u32 2147483648, %v581_v46  ;;  %vm587_vm11 = vweird.f32 %v581_v46  ;;  %v591_v50 = vand.u32 2147483647, %v581_v46 }
 0xbce   :  { %v594_v51 = vor.u32 1.1754944e-38, %v593_v7  ;;  %vm592_vm13 = vcmp.eq.f32.partialorder %v591_v50, 8.507059e+37 }
 0xbd2   :  { %v866_v47 = vpop.eup %865 }
 0xbd3   :  { %v583_v48 = vmul.f32 %v866_v47, %v581_v46  ;;  %vm588_vm10 = vweird.f32 %v866_v47 }
 0xbd4   :  { %vm589_vm12 = vmor %vm587_vm11, %vm588_vm10 }
 0xbd5   :  { %v584_v1 = vsub.f32 1.0, %v583_v48 }
 0xbd7   :  { %v585_v3 = vmul.f32 %v866_v47, %v584_v1 }
 0xbd9   :  { %v586_v49 = vadd.f32 %v866_v47, %v585_v3 }
 0xbdb   :  { %v590_v9 = vsel %vm589_vm12, %v866_v47, %v586_v49 }
 0xbdc   :  { %v595_v53 = vsel %vm592_vm13, %v594_v51, %v590_v9 }
 0xbdd   :  { %v609_v58 = vsub.f32 1.0, %v595_v53  ;;  %v615_v60 = vmul.f32 %v595_v53, %v547_v33 }
 0xc33   :  { %v600_v52 = vpop.permute.xlu0 %599 }
 0xc34   :  { %v602_v54 = vmul.f32 %v600_v52, %v595_v53 }
 0xc36   :  { %604 = vrot.lane.b32.xlu1 %v602_v54, %s908_s7 }
 0xca8   :  { %v605_v55 = vpop.permute.xlu1 %604 }
 0xca9   :  { %v607_v56 = vadd.f32 %v605_v55, %v551_v42  ;;  %v687_v42 = vld [vmem:[#allocation2 + $0x7] ss:$8 sm:$0xf] }
 0xcaa   :  { %v689_v44 = vor.u32 %v688_v43, %v687_v42 }
 0xcab   :  { %867 = vtanh.f32 %v607_v56 }
 0xcb1   :  { %v868_v57 = vpop.eup %867 }
 0xcb2   :  { %611 = vrot.lane.b32.xlu2 %v868_v57, %s910_s4 }
 0xd0c   :  { %v612_v59 = vpop.permute.xlu2 %611 }
 0xd0d   :  { %v614_v61 = vmul.f32 %v612_v59, %v609_v58 }
 0xd0f   :  { %v1152_v63 = vadd.f32 %v615_v60, %v614_v61 }
 0xd11   :  { %622 = vrot.lane.b32.xlu0 %v1152_v63, %s910_s4 }
 0xd83   :  { %v623_v2 = vpop.permute.xlu0 %622 }
 0xd84   :  { %816 = vmatmul.msk.f32.vlgmr.msra.gmra.mxu1 %vm200_vm2, %v623_v2 }
 0xe01   :  { %v643_v4 = vpop.f32.mrf.mxu1 }
 0xe02   :  { %v666_v5 = vadd.f32 %v643_v4, %v1084_v35  ;;  %v646_v11 = vadd.f32 %v643_v4, %v620_v10 }
 0xe04   :  { %668 = vrot.lane.b32.xlu1 %v666_v5, %s908_s7  ;;  %v817_v12 = vmul.f32 -1.442695, %v646_v11  ;;  %v770_v5 = vsel %vm200_vm2, %v1101_v39, %v1113_v0 }
 0xe06   :  { %869 = vpow2.f32 %v817_v12 }
 0xe0c   :  { %v870_v13 = vpop.eup %869 }
 0xe0d   :  { %v650_v14 = vadd.f32 1.0, %v870_v13 }
 0xe0f   :  { %871 = vrcp.f32 %v650_v14  ;;  %v662_v20 = vand.u32 2147483648, %v650_v14  ;;  %vm656_vm15 = vweird.f32 %v650_v14  ;;  %v660_v21 = vand.u32 2147483647, %v650_v14 }
 0xe11   :  { %v663_v23 = vor.u32 1.1754944e-38, %v662_v20  ;;  %vm661_vm1 = vcmp.eq.f32.partialorder %v660_v21, 8.507059e+37 }
 0xe15   :  { %v872_v15 = vpop.eup %871 }
 0xe16   :  { %v652_v16 = vmul.f32 %v872_v15, %v650_v14  ;;  %vm657_vm14 = vweird.f32 %v872_v15 }
 0xe17   :  { %vm658_vm0 = vmor %vm656_vm15, %vm657_vm14 }
 0xe18   :  { %v653_v17 = vsub.f32 1.0, %v652_v16 }
 0xe1a   :  { %v654_v18 = vmul.f32 %v872_v15, %v653_v17 }
 0xe1c   :  { %v655_v19 = vadd.f32 %v872_v15, %v654_v18 }
 0xe1e   :  { %v659_v22 = vsel %vm658_vm0, %v872_v15, %v655_v19 }
 0xe1f   :  { %v664_v25 = vsel %vm661_vm1, %v663_v23, %v659_v22 }
 0xe20   :  { %v678_v30 = vsub.f32 1.0, %v664_v25  ;;  %v684_v32 = vmul.f32 %v664_v25, %v1152_v63 }
 0xe76   :  { %v669_v24 = vpop.permute.xlu1 %668 }
 0xe77   :  { %v671_v26 = vmul.f32 %v669_v24, %v664_v25 }
 0xe79   :  { %673 = vrot.lane.b32.xlu2 %v671_v26, %s908_s7 }
 0xed3   :  { %v674_v27 = vpop.permute.xlu2 %673 }
 0xed4   :  { %v676_v28 = vadd.f32 %v674_v27, %v620_v10 }
 0xed6   :  { %873 = vtanh.f32 %v676_v28 }
 0xedc   :  { %v874_v29 = vpop.eup %873 }
 0xedd   :  { %680 = vrot.lane.b32.xlu0 %v874_v29, %s910_s4 }
 0xf4f   :  { %v681_v31 = vpop.permute.xlu0 %680 }
 0xf50   :  { %v683_v33 = vmul.f32 %v681_v31, %v678_v30 }
 0xf52   :  { %v685_v37 = vadd.f32 %v684_v32, %v683_v33 }
 0xf54   :  { %691 = vrot.lane.b32.xlu1 %v685_v37, %s910_s4 }
 0xfc6   :  { %v692_v38 = vpop.permute.xlu1 %691 }
 0xfc7   :  { %818 = vmatmul.msk.f32.vlgmr.msra.gmra.mxu2 %vm200_vm2, %v692_v38 }
0x104a   :  { %v712_v40 = vpop.f32.mrf.mxu2 }
0x104b   :  { %v735_v41 = vadd.f32 %v712_v40, %v1084_v35  ;;  %v715_v45 = vadd.f32 %v712_v40, %v689_v44 }
0x104d   :  { %737 = vrot.lane.b32.xlu2 %v735_v41, %s908_s7  ;;  %v819_v46 = vmul.f32 -1.442695, %v715_v45 }
0x104f   :  { %875 = vpow2.f32 %v819_v46 }
0x1055   :  { %756 = vrot.lane.b32.xlu2 %v1123_v34, %s909_s0  ;;  %v876_v47 = vpop.eup %875 }
0x1056   :  { %v719_v48 = vadd.f32 1.0, %v876_v47 }
0x1058   :  { %877 = vrcp.f32 %v719_v48  ;;  %v731_v35 = vand.u32 2147483648, %v719_v48  ;;  %vm725_vm5 = vweird.f32 %v719_v48  ;;  %v729_v9 = vand.u32 2147483647, %v719_v48 }
0x105a   :  { %v732_v51 = vor.u32 1.1754944e-38, %v731_v35  ;;  %vm730_vm7 = vcmp.eq.f32.partialorder %v729_v9, 8.507059e+37 }
0x105e   :  { %v878_v1 = vpop.eup %877 }
0x105f   :  { %v721_v3 = vmul.f32 %v878_v1, %v719_v48  ;;  %vm726_vm4 = vweird.f32 %v878_v1 }
0x1060   :  { %vm727_vm6 = vmor %vm725_vm5, %vm726_vm4 }
0x1061   :  { %v722_v49 = vsub.f32 1.0, %v721_v3 }
0x1063   :  { %v723_v7 = vmul.f32 %v878_v1, %v722_v49 }
0x1065   :  { %v724_v50 = vadd.f32 %v878_v1, %v723_v7 }
0x1067   :  { %v728_v34 = vsel %vm727_vm6, %v878_v1, %v724_v50 }
0x1068   :  { %v733_v53 = vsel %vm730_vm7, %v732_v51, %v728_v34 }
0x1069   :  { %v747_v58 = vsub.f32 1.0, %v733_v53  ;;  %v753_v60 = vmul.f32 %v733_v53, %v685_v37 }
0x10a7   :  { %v738_v52 = vpop.permute.xlu2 %737 }
0x10a8   :  { %v740_v54 = vmul.f32 %v738_v52, %v733_v53 }
0x10aa   :  { %742 = vrot.lane.b32.xlu0 %v740_v54, %s908_s7 }
0x10af   :  { %v757_v4 = vpop.permute.xlu2 %756 }
0x10b0   :  { %v772_v6 = vsel %vm771_vm8, %v770_v5, %v757_v4 }
0x10b2   :  { %763 = vrot.lane.b32.xlu0 %v685_v37, %s909_s0 }
0x111c   :  { %v743_v55 = vpop.permute.xlu0 %742 }
0x111d   :  { %v745_v56 = vadd.f32 %v743_v55, %v689_v44 }
0x111f   :  { %879 = vtanh.f32 %v745_v56 }
0x1124   :  { %v764_v11 = vpop.permute.xlu0 %763 }
0x1125   :  { %v880_v57 = vpop.eup %879 }
0x1126   :  { %749 = vrot.lane.b32.xlu1 %v880_v57, %s910_s4 }
0x112e   :  { %759 = vrot.lane.b32.xlu1 %v1133_v62, %s908_s7  ;;  %v774_v62 = vsel %vm200_vm2, %v1144_v36, %v1152_v63 }
0x112f   :  { %v775_v12 = vsel %vm771_vm8, %v774_v62, %v764_v11 }
0x1198   :  { %v750_v59 = vpop.permute.xlu1 %749 }
0x1199   :  { %v752_v61 = vmul.f32 %v750_v59, %v747_v58 }
0x119b   :  { %v754_v2 = vadd.f32 %v753_v60, %v752_v61 }
0x119d   :  { %767 = vrot.lane.b32.xlu2 %v754_v2, %s908_s7 }
0x11a0   :  { %v760_v8 = vpop.permute.xlu1 %759 }
0x11a1   :  { %v773_v10 = vsel %vm182_vm3, %v772_v6, %v760_v8 }
0x11a2   :  { %777 = vst [vmem:[#allocation3] sm:$0xff] %v773_v10 }
0x11f7   :  { %v768_v13 = vpop.permute.xlu2 %767 }
0x11f8   :  { %v776_v39 = vsel %vm182_vm3, %v775_v12, %v768_v13 }
0x11f9   :  { %778 = vst [vmem:[#allocation3 + $0x8] sm:$0xff] %v776_v39 }
0x11fa   :  { %789 = dma.vmem_to_hbm [thread:$0]  %s785_s29, 256, %s787_s9, [#allocation4]  }
0x11fb   :  { %905 = dma.done.wait [#allocation4], 256  }
0x11fc   :  { %906 = vsyncadd [#allocation4], 4294967040 }
0x11fd   :  { %794 = vsyncpa [#allocation4], 1 }

</bundles_post_ra>
